<compile_context>
chip_gen: v7x
topology: tpu7x:2x2x1
jax: 0.10.0
libtpu: 0.0.40
codegen_flags: <defaults>
</compile_context>

<pallas_src>
import functools

import jax
import jax.numpy as jnp
from jax.experimental import pallas as pl
from jax.experimental.pallas import tpu as pltpu

LANE = 128  # batch tile lives on the lane axis; must be a multiple of 128


def dqn_kernel(x_ref, w1_ref, b1_ref, w2_ref, b2_ref, w3_ref, b3_ref, o_ref):
    # Batch-on-lanes: every operand has the batch tile on the last (lane) axis.
    #   x_ref : (S, TILE_B)   w*_ref : (out, in)   b*_ref : (out, 1)   o_ref : (A, TILE_B)
    # Three MXU matmuls with f32 operands + f32 accumulation; bias add / ReLU on the VPU.
    x = x_ref[...]
    h1 = jnp.maximum(
        jnp.dot(w1_ref[...], x, preferred_element_type=jnp.float32) + b1_ref[...], 0.0)
    h2 = jnp.maximum(
        jnp.dot(w2_ref[...], h1, preferred_element_type=jnp.float32) + b2_ref[...], 0.0)
    o_ref[...] = (
        jnp.dot(w3_ref[...], h2, preferred_element_type=jnp.float32) + b3_ref[...]
    ).astype(o_ref.dtype)


def _round_up(n, m):
    return ((n + m - 1) // m) * m


@functools.partial(jax.jit, static_argnames=("tile_b",))
def dqn_forward(x, params, *, tile_b=2048):
    """x: (B, nb_states) float32.  params: kernel-ready f32 tensors with weights in
    PyTorch Linear layout (out, in) and biases (out, 1).  Returns (B, nb_actions) f32."""
    w1, b1, w2, b2, w3, b3 = (
        params["w1"], params["b1"], params["w2"],
        params["b2"], params["w3"], params["b3"],
    )
    B, S = x.shape
    H = w1.shape[0]
    A = w3.shape[0]

    # Batch tile on the lane axis: multiple of 128.  Keep >= 2 tiles whenever the
    # padded batch allows it so the "parallel" axis shards across v7x's 2 TCs.
    b_ceil = _round_up(B, LANE)
    tile_b = _round_up(max(tile_b, LANE), LANE)
    if b_ceil > LANE:
        tile_b = min(tile_b, _round_up(pl.cdiv(b_ceil, 2), LANE))
    tile_b = min(tile_b, b_ceil)
    b_pad = _round_up(b_ceil, tile_b)
    grid = (b_pad // tile_b,)

    # Transpose once (batch -> lanes); pad only the ragged tail columns.
    x_t = x.T
    if b_pad != B:
        x_t = jnp.pad(x_t, ((0, 0), (0, b_pad - B)))

    const = lambda i: (0, 0)  # weights/biases stay VMEM-resident across the batch grid
    flops = 2 * b_pad * (S * H + H * H + H * A)
    bytes_accessed = 4 * (
        S * b_pad + A * b_pad
        + w1.size + b1.size + w2.size + b2.size + w3.size + b3.size
    )

    out_t = pl.pallas_call(
        dqn_kernel,
        out_shape=jax.ShapeDtypeStruct((A, b_pad), jnp.float32),
        grid=grid,
        in_specs=[
            pl.BlockSpec((S, tile_b), lambda i: (0, i)),  # x^T: batch-tiled on lanes
            pl.BlockSpec((H, S), const),                  # W1 (out, in)
            pl.BlockSpec((H, 1), const),                  # b1
            pl.BlockSpec((H, H), const),                  # W2
            pl.BlockSpec((H, 1), const),                  # b2
            pl.BlockSpec((A, H), const),                  # W3 (no lane padding needed)
            pl.BlockSpec((A, 1), const),                  # b3
        ],
        out_specs=pl.BlockSpec((A, tile_b), lambda i: (0, i)),
        compiler_params=pltpu.CompilerParams(
            dimension_semantics=("parallel",),            # megacore sharding on v7x
        ),
        cost_estimate=pl.CostEstimate(
            flops=flops, transcendentals=0, bytes_accessed=bytes_accessed),
    )(x_t, w1, b1, w2, b2, w3, b3)
    # Keep the slice adjacent to the call: padded batch columns hold bias-propagated
    # garbage and must never be consumed.
    return out_t[:, :B].T


def init_params(key, nb_states, nb_actions):
    """Deterministic init matching the PyTorch module (uniform +/- 1/sqrt(fan_in)),
    stored in kernel-ready layout: weights (out, in) like torch.nn.Linear, biases (out, 1).
    Prepared once -- no per-call casting/padding in the forward path."""
    ks = jax.random.split(key, 6)

    def unif(k, shape, fan_in):
        bound = 1.0 / jnp.sqrt(jnp.float32(fan_in))
        return jax.random.uniform(k, shape, jnp.float32, -bound, bound)

    return {
        "w1": unif(ks[0], (24, nb_states), nb_states),
        "b1": unif(ks[1], (24, 1), nb_states),
        "w2": unif(ks[2], (24, 24), 24),
        "b2": unif(ks[3], (24, 1), 24),
        "w3": unif(ks[4], (nb_actions, 24), 24),
        "b3": unif(ks[5], (nb_actions, 1), 24),
    }


def dqn_reference(x, p):
    """Pure-JAX f32 reference mirroring the PyTorch forward: relu(xW1^T+b1) -> ... -> layer3."""
    h1 = jnp.maximum(x @ p["w1"].T + p["b1"].T, 0.0)
    h2 = jnp.maximum(h1 @ p["w2"].T + p["b2"].T, 0.0)
    return h2 @ p["w3"].T + p["b3"].T


if __name__ == "__main__":
    nb_states, nb_actions = 4, 2
    key = jax.random.PRNGKey(0)
    kx, kp, kx2 = jax.random.split(key, 3)
    params = init_params(kp, nb_states, nb_actions)

    # Tolerance note: the kernel keeps all data in f32, but the MXU's default f32
    # matmul path may truncate operands to bf16 per pass, while the XLA reference
    # for these tiny dots may be computed exactly; 2e-2 comfortably covers that
    # while still catching any layout/weight bugs (which produce O(0.1-1) errors).
    TOL = 2e-2

    # Small single-env style batch (pads 8 -> 128, single-tile grid).
    x = jax.random.normal(kx, (8, nb_states), jnp.float32)
    out = jax.block_until_ready(dqn_forward(x, params))
    ref = dqn_reference(x, params)
    assert out.shape == (8, nb_actions), out.shape
    assert jnp.allclose(out, ref, atol=TOL, rtol=TOL)

    # Replay-buffer style batch: pads 300 -> 512 and runs a 2-tile grid
    # (exercises batch padding and the "parallel" axis / both v7x TensorCores).
    x2 = jax.random.normal(kx2, (300, nb_states), jnp.float32)
    out2 = jax.block_until_ready(dqn_forward(x2, params))
    ref2 = dqn_reference(x2, params)
    assert out2.shape == (300, nb_actions), out2.shape
    assert jnp.allclose(out2, ref2, atol=TOL, rtol=TOL)

    print("KERNEL_OK")
</pallas_src>

<mosaic_0001>
module attributes {stable_mosaic.version = 11 : i64} {
  func.func @dqn_kernel(%arg0: i32, %arg1: memref<4x128xf32, #tpu.memory_space<vmem>>, %arg2: memref<24x4xf32, #tpu.memory_space<vmem>>, %arg3: memref<24x1xf32, #tpu.memory_space<vmem>>, %arg4: memref<24x24xf32, #tpu.memory_space<vmem>>, %arg5: memref<24x1xf32, #tpu.memory_space<vmem>>, %arg6: memref<2x24xf32, #tpu.memory_space<vmem>>, %arg7: memref<2x1xf32, #tpu.memory_space<vmem>>, %arg8: memref<2x128xf32, #tpu.memory_space<vmem>>) attributes {dimension_semantics = [#tpu.dimension_semantics<parallel>], iteration_bounds = array<i64: 1>, scalar_prefetch = 0 : i64, scratch_operands = 0 : i64, tpu.core_type = #tpu.core_type<tc>, window_params = [{transform_indices = @transform_0, window_bounds = array<i64: 4, 128>}, {pipeline_mode = #tpu.pipeline_mode<synchronous>, transform_indices = @transform_1, window_bounds = array<i64: 24, 4>}, {pipeline_mode = #tpu.pipeline_mode<synchronous>, transform_indices = @transform_2, window_bounds = array<i64: 24, 1>}, {pipeline_mode = #tpu.pipeline_mode<synchronous>, transform_indices = @transform_3, window_bounds = array<i64: 24, 24>}, {pipeline_mode = #tpu.pipeline_mode<synchronous>, transform_indices = @transform_4, window_bounds = array<i64: 24, 1>}, {pipeline_mode = #tpu.pipeline_mode<synchronous>, transform_indices = @transform_5, window_bounds = array<i64: 2, 24>}, {pipeline_mode = #tpu.pipeline_mode<synchronous>, transform_indices = @transform_6, window_bounds = array<i64: 2, 1>}, {transform_indices = @transform_7, window_bounds = array<i64: 2, 128>}]} {
    %c0 = arith.constant 0 : index
    %c0_0 = arith.constant 0 : index
    %0 = vector.load %arg1[%c0, %c0_0] : memref<4x128xf32, #tpu.memory_space<vmem>>, vector<4x128xf32>
    %c0_1 = arith.constant 0 : index
    %c0_2 = arith.constant 0 : index
    %1 = vector.load %arg2[%c0_1, %c0_2] : memref<24x4xf32, #tpu.memory_space<vmem>>, vector<24x4xf32>
    %cst = arith.constant dense<0.000000e+00> : vector<24x128xf32>
    %2 = tpu.matmul %1, %0, %cst {dimension_numbers = #tpu.dot_dimension_numbers<[1], [0], [0], [1], [0, 0, 1, 1], [], []>} : vector<24x4xf32>, vector<4x128xf32>, vector<24x128xf32> -> vector<24x128xf32>
    %c0_3 = arith.constant 0 : index
    %c0_4 = arith.constant 0 : index
    %3 = vector.load %arg3[%c0_3, %c0_4] : memref<24x1xf32, #tpu.memory_space<vmem>>, vector<24x1xf32>
    %4 = vector.broadcast %3 : vector<24x1xf32> to vector<24x128xf32>
    %5 = arith.addf %2, %4 : vector<24x128xf32>
    %cst_5 = arith.constant 0.000000e+00 : f32
    %6 = vector.broadcast %cst_5 : f32 to vector<24x128xf32>
    %7 = arith.maximumf %5, %6 : vector<24x128xf32>
    %c0_6 = arith.constant 0 : index
    %c0_7 = arith.constant 0 : index
    %8 = vector.load %arg4[%c0_6, %c0_7] : memref<24x24xf32, #tpu.memory_space<vmem>>, vector<24x24xf32>
    %cst_8 = arith.constant dense<0.000000e+00> : vector<24x128xf32>
    %9 = tpu.matmul %8, %7, %cst_8 {dimension_numbers = #tpu.dot_dimension_numbers<[1], [0], [0], [1], [0, 0, 1, 1], [], []>} : vector<24x24xf32>, vector<24x128xf32>, vector<24x128xf32> -> vector<24x128xf32>
    %c0_9 = arith.constant 0 : index
    %c0_10 = arith.constant 0 : index
    %10 = vector.load %arg5[%c0_9, %c0_10] : memref<24x1xf32, #tpu.memory_space<vmem>>, vector<24x1xf32>
    %11 = vector.broadcast %10 : vector<24x1xf32> to vector<24x128xf32>
    %12 = arith.addf %9, %11 : vector<24x128xf32>
    %cst_11 = arith.constant 0.000000e+00 : f32
    %13 = vector.broadcast %cst_11 : f32 to vector<24x128xf32>
    %14 = arith.maximumf %12, %13 : vector<24x128xf32>
    %c0_12 = arith.constant 0 : index
    %c0_13 = arith.constant 0 : index
    %15 = vector.load %arg6[%c0_12, %c0_13] : memref<2x24xf32, #tpu.memory_space<vmem>>, vector<2x24xf32>
    %cst_14 = arith.constant dense<0.000000e+00> : vector<2x128xf32>
    %16 = tpu.matmul %15, %14, %cst_14 {dimension_numbers = #tpu.dot_dimension_numbers<[1], [0], [0], [1], [0, 0, 1, 1], [], []>} : vector<2x24xf32>, vector<24x128xf32>, vector<2x128xf32> -> vector<2x128xf32>
    %c0_15 = arith.constant 0 : index
    %c0_16 = arith.constant 0 : index
    %17 = vector.load %arg7[%c0_15, %c0_16] : memref<2x1xf32, #tpu.memory_space<vmem>>, vector<2x1xf32>
    %18 = vector.broadcast %17 : vector<2x1xf32> to vector<2x128xf32>
    %19 = arith.addf %16, %18 : vector<2x128xf32>
    %c0_17 = arith.constant 0 : index
    %c0_18 = arith.constant 0 : index
    %20 = vector.load %arg8[%c0_17, %c0_18] : memref<2x128xf32, #tpu.memory_space<vmem>>, vector<2x128xf32>
    tpu.vector_store %arg8[%c0_17, %c0_18], %19 {strides = array<i32>} : memref<2x128xf32, #tpu.memory_space<vmem>>, vector<2x128xf32>,
    return
  }
  func.func @transform_0(%arg0: i32) -> (i32, i32) {
    %c0_i32 = arith.constant 0 : i32
    %c0_i32_0 = arith.constant 0 : i32
    return %c0_i32, %arg0 : i32, i32
  }
  func.func @transform_1(%arg0: i32) -> (i32, i32) {
    %c0_i32 = arith.constant 0 : i32
    %c0_i32_0 = arith.constant 0 : i32
    %c0_i32_1 = arith.constant 0 : i32
    return %c0_i32, %c0_i32_0 : i32, i32
  }
  func.func @transform_2(%arg0: i32) -> (i32, i32) {
    %c0_i32 = arith.constant 0 : i32
    %c0_i32_0 = arith.constant 0 : i32
    %c0_i32_1 = arith.constant 0 : i32
    return %c0_i32, %c0_i32_0 : i32, i32
  }
  func.func @transform_3(%arg0: i32) -> (i32, i32) {
    %c0_i32 = arith.constant 0 : i32
    %c0_i32_0 = arith.constant 0 : i32
    %c0_i32_1 = arith.constant 0 : i32
    return %c0_i32, %c0_i32_0 : i32, i32
  }
  func.func @transform_4(%arg0: i32) -> (i32, i32) {
    %c0_i32 = arith.constant 0 : i32
    %c0_i32_0 = arith.constant 0 : i32
    %c0_i32_1 = arith.constant 0 : i32
    return %c0_i32, %c0_i32_0 : i32, i32
  }
  func.func @transform_5(%arg0: i32) -> (i32, i32) {
    %c0_i32 = arith.constant 0 : i32
    %c0_i32_0 = arith.constant 0 : i32
    %c0_i32_1 = arith.constant 0 : i32
    return %c0_i32, %c0_i32_0 : i32, i32
  }
  func.func @transform_6(%arg0: i32) -> (i32, i32) {
    %c0_i32 = arith.constant 0 : i32
    %c0_i32_0 = arith.constant 0 : i32
    %c0_i32_1 = arith.constant 0 : i32
    return %c0_i32, %c0_i32_0 : i32, i32
  }
  func.func @transform_7(%arg0: i32) -> (i32, i32) {
    %c0_i32 = arith.constant 0 : i32
    %c0_i32_0 = arith.constant 0 : i32
    return %c0_i32, %arg0 : i32, i32
  }
}

</mosaic_0001>

<bundles_post_ra>
// kernel: dqn_forward.1
= control target key start
LH: loop header
LB: loop body
LE: loop exit
PB: predicated region body
PF: predicated region fallthrough
CT: control target
= control target key end

     0   :  { %vm58_vm0 = vcmask 1043456   ;;  %vm48_vm1 = vcmask 31744   ;;  %v413_v0 = vmov 0.0   ;;  %vm414_vm2 = vmmov 0   ;;  %s529_s0 = inlined_call_operand.vmem [shape: f32[4,128], index: 0, kind: input, shape index: {}]   ;;  %s530_s1 = inlined_call_operand.vmem [shape: f32[24,4], index: 1, kind: input, shape index: {}]   ;;  %s531_s2 = inlined_call_operand.vmem [shape: f32[24,1], index: 2, kind: input, shape index: {}]   ;;  %s532_s4 = inlined_call_operand.vmem [shape: f32[24,1], index: 4, kind: input, shape index: {}]   ;;  %s533_s6 = inlined_call_operand.vmem [shape: f32[2,1], index: 6, kind: input, shape index: {}]   ;;  %s534_s3 = inlined_call_operand.vmem [shape: f32[24,24], index: 3, kind: input, shape index: {}]   ;;  %s535_s5 = inlined_call_operand.vmem [shape: f32[2,24], index: 5, kind: input, shape index: {}]   ;;  %s536_s7 = inlined_call_operand.vmem [shape: f32[2,128], index: 7, kind: output, shape index: {}]  }
   0x1   :  { %366 = vmatprep.subr.mxu0 %v413_v0  ;;  %v26_v1 = vld [vmem:[%s529_s0] sm:$0xf]  ;;  %368 = vmatprep.mubr.msk.f32.mxu0 %vm414_vm2, %v413_v0  ;;  %v415_v3 = vmov 0   ;;  %v32_v5 = vld [vmem:[%s531_s2 + $0x10] sm:$0xff]  ;;  %v28_v6 = vld [vmem:[%s530_s1 + $0x8] sm:$0xff]  ;;  %v416_v13 = vmov 0.0|0.0  }
   0x2   :  { %v27_v2 = vld [vmem:[%s530_s1] sm:$0xff]  ;;  %367 = vmatpush3.msk.msra.mxu0 %vm58_vm0, %v26_v1  ;;  %411 = vset.pattern.permute.xlu0 %v415_v3  ;;  %v31_v7 = vld [vmem:[%s531_s2 + $0x8] sm:$0xff]  ;;  %v29_v9 = vld [vmem:[%s530_s1 + $0x10] sm:$0xff]  ;;  %vm166_vm3 = vcmask 195584  }
   0x3   :  { %v30_v4 = vld [vmem:[%s531_s2] sm:$0xff]  ;;  %369 = vmatmul.mubr.msk.f32.vlgmr.msra.gmra.mrb[0].mxu0 %vm48_vm1, %v27_v2  ;;  %412 = vset.pattern.permute.xlu1 %v415_v3  ;;  %v149_v10 = vld [vmem:[%s532_s4 + $0x8] sm:$0xff]  ;;  %v150_v11 = vld [vmem:[%s532_s4 + $0x10] sm:$0xff] }
   0x4   :  { %35 = vperm.xlu0 %411, %v30_v4   ;;  %371 = vmatprep.mubr.msk.f32.mxu0 %vm414_vm2, %v413_v0  ;;  %v148_v8 = vld [vmem:[%s532_s4] sm:$0xff]  ;;  %v146_v31 = vld [vmem:[%s534_s3 + $0x8] sm:$0xff]  ;;  %v147_v32 = vld [vmem:[%s534_s3 + $0x10] sm:$0xff] }
   0x5   :  { %45 = vperm.xlu1 %412, %v32_v5   ;;  %383 = vmatprep.mubr.msk.f32.mxu1 %vm414_vm2, %v413_v0  ;;  %v260_v12 = vld [vmem:[%s533_s6] sm:$0x3] }
   0x6   :  { %401 = vmatprep.subr.bf16.mxu1 %v416_v13  ;;  %404 = vmatprep.subr.bf16.mxu0 %v416_v13  ;;  %v145_v30 = vld [vmem:[%s534_s3] sm:$0xff] }
   0x7   :  { %372 = vmatmul.mubr.msk.f32.gmra.mrb[2].mxu0 %vm48_vm1, %v28_v6  ;;  %v259_v49 = vld [vmem:[%s535_s5] sm:$0x3] }
   0x8   :  { %40 = vperm.xlu0 %411, %v31_v7   ;;  %374 = vmatprep.mubr.msk.f32.mxu0 %vm414_vm2, %v413_v0 }
   0x9   :  { %153 = vperm.xlu1 %412, %v148_v8  }
   0xb   :  { %375 = vmatmul.mubr.msk.f32.gmra.mrb[4].mxu0 %vm48_vm1, %v29_v9 }
   0xc   :  { %158 = vperm.xlu0 %411, %v149_v10   ;;  %398 = vmatprep.mubr.msk.f32.mxu0 %vm414_vm2, %v413_v0 }
   0xd   :  { %163 = vperm.xlu1 %412, %v150_v11  }
  0x10   :  { %263 = vperm.xlu0 %411, %v260_v12  }
  0x83   :  { %v36_v14 = vpop.permute.xlu0 %35 }
  0x84   :  { %v46_v24 = vpop.permute.xlu1 %45 }
  0x87   :  { %v41_v18 = vpop.permute.xlu0 %40 }
  0x88   :  { %v154_v35 = vpop.permute.xlu1 %153 }
  0x8b   :  { %v159_v37 = vpop.permute.xlu0 %158 }
  0x8c   :  { %v164_v43 = vpop.permute.xlu1 %163 }
  0x8f   :  { %v264_v50 = vpop.permute.xlu0 %263 }
  0xd6   :  { %v128_v15 = vpop.f32.mrb[0].mxu0 }
  0xd7   :  { %v370_v16 = vpop.f32.mrb[1].mxu0  ;;  %v129_v17 = vadd.f32 %v128_v15, %v36_v14 }
  0xd9   :  { %v142_v22 = vmax.f32 %v129_v17, 0.0 }
  0xda   :  { %v133_v19 = vpop.f32.mrb[2].mxu0 }
  0xdb   :  { %v134_v20 = vadd.f32 %v133_v19, %v41_v18  ;;  %v373_v21 = vpop.f32.mrb[3].mxu0 }
  0xdd   :  { %v143_v23 = vmax.f32 %v134_v20, 0.0 }
  0xde   :  { %v138_v25 = vpop.f32.mrb[4].mxu0 }
  0xdf   :  { %v139_v26 = vadd.f32 %v138_v25, %v46_v24  ;;  %v376_v27 = vpop.f32.mrb[5].mxu0  ;;  %v402_v28 = vpack.c.bf16 %v143_v23, %v142_v22 }
  0xe1   :  { %v144_v29 = vmax.f32 %v139_v26, 0.0  ;;  %403 = vmatpush3.bf16.msra.mxu1 %v402_v28 }
  0xe2   :  { %381 = vmatprep.subr.mxu1 %v413_v0 }
  0xe5   :  { %382 = vmatpush3.msra.mxu1 %v144_v29 }
  0xe6   :  { %384 = vmatmul.mubr.msk.f32.vlgmr.msra.gmra.mrb[0].mxu1 %vm166_vm3, %v145_v30 }
  0xe7   :  { %386 = vmatprep.mubr.msk.f32.mxu1 %vm414_vm2, %v413_v0 }
  0xea   :  { %387 = vmatmul.mubr.msk.f32.gmra.mrb[2].mxu1 %vm166_vm3, %v146_v31 }
  0xeb   :  { %389 = vmatprep.mubr.msk.f32.mxu1 %vm414_vm2, %v413_v0 }
  0xee   :  { %390 = vmatmul.mubr.msk.f32.gmra.mrb[4].mxu1 %vm166_vm3, %v147_v32 }
 0x1b9   :  { %v242_v33 = vpop.f32.mrb[0].mxu1 }
 0x1ba   :  { %v385_v34 = vpop.f32.mrb[1].mxu1  ;;  %v243_v36 = vadd.f32 %v242_v33, %v154_v35 }
 0x1bc   :  { %v256_v41 = vmax.f32 %v243_v36, 0.0 }
 0x1bd   :  { %v247_v38 = vpop.f32.mrb[2].mxu1 }
 0x1be   :  { %v248_v39 = vadd.f32 %v247_v38, %v159_v37  ;;  %v388_v40 = vpop.f32.mrb[3].mxu1 }
 0x1c0   :  { %v257_v42 = vmax.f32 %v248_v39, 0.0 }
 0x1c1   :  { %v252_v44 = vpop.f32.mrb[4].mxu1 }
 0x1c2   :  { %v405_v45 = vpack.c.bf16 %v257_v42, %v256_v41  ;;  %v253_v46 = vadd.f32 %v252_v44, %v164_v43  ;;  %v391_v47 = vpop.f32.mrb[5].mxu1 }
 0x1c4   :  { %406 = vmatpush3.bf16.msra.mxu0 %v405_v45  ;;  %v258_v48 = vmax.f32 %v253_v46, 0.0 }
 0x1c5   :  { %396 = vmatprep.subr.mxu0 %v413_v0 }
 0x1c8   :  { %397 = vmatpush3.msra.mxu0 %v258_v48 }
 0x1c9   :  { %399 = vmatmul.mubr.msk.f32.vlgmr.msra.gmra.mrb[6].mxu0 %vm166_vm3, %v259_v49 }
 0x29c   :  { %v335_v51 = vpop.f32.mrb[6].mxu0 }
 0x29d   :  { %v336_v52 = vadd.f32 %v335_v51, %v264_v50  ;;  %v400_v53 = vpop.f32.mrb[7].mxu0 }
 0x29f   :  { %339 = vst [vmem:[%s536_s7] sm:$0x3] %v336_v52 }

</bundles_post_ra>
